<compile_context>
chip_gen: v7x
topology: tpu7x:2x2x1
jax: 0.10.0
libtpu: 0.0.40
codegen_flags: <defaults>
</compile_context>

<pallas_src>
import jax
import jax.numpy as jnp
from jax.experimental import pallas as pl
from jax.experimental.pallas import tpu as pltpu

# ----------------------------- model config ---------------------------------
NUM_JOINTS_IN = 4
IN_FEATURES = 2
NUM_JOINTS_OUT = 4
FILTER_WIDTHS = (3,)          # odd, as asserted in __init__
CHANNELS = 32
NEG_SLOPE = 0.01              # LeakyReLU(negative_slope=0.01)
BN_EPS = 1e-5

C_IN = NUM_JOINTS_IN * IN_FEATURES      # Conv1d input channels (J*F)
C_OUT = NUM_JOINTS_OUT * 3              # final output channels
KW = FILTER_WIDTHS[0]                   # expand_conv kernel width
K_REAL = KW * C_IN                      # im2col contraction dim (24, unpadded in HBM)

# ----------------------------- TPU tiling config ------------------------------
LANE = 128
M_TILE_MAX = 2048      # rows per grid step (sweep 512-2048; ~1.2 MiB double-buffered)
H_PAD = LANE           # CHANNELS = 32 -> padded to 128 lanes (VMEM weight only)
N_PAD = LANE           # C_OUT = 12    -> 128-lane-dense bf16 output (unmasked vst)


def _round_up(x, m):
    return ((x + m - 1) // m) * m


def _tensorcores_per_chip():
    """2 grid steps minimum on multi-TC chips (v7x, megacore), 1 on v5e/v6e."""
    try:
        kind = jax.devices()[0].device_kind.lower()
    except Exception:
        return 2
    single_tc = ("v5e", "v5 lite", "v5litepod", "v6e", "v6 lite", "v6litepod")
    if any(s in kind for s in single_tc):
        return 1
    return 2


# ------------------------------ Pallas kernel --------------------------------
def _fused_block_kernel(x_ref, w1_ref, p_ref, w2_ref, o_ref):
    """One M-tile: im2col GEMM (BN scale pre-folded) -> +bias -> LeakyReLU -> 1x1 GEMM."""
    # (M_TILE, K_REAL) bf16 x (K_REAL, H_PAD) bf16 -> f32 accumulate on the MXU.
    acc = jnp.dot(x_ref[...], w1_ref[...], preferred_element_type=jnp.float32)

    bias = p_ref[0:1, :]           # folded conv-bias + BN bias (1, H_PAD)
    b2 = p_ref[1:2, :]             # shrink-conv bias           (1, N_PAD)

    h = acc + bias
    h = jnp.where(h >= 0, h, NEG_SLOPE * h)          # LeakyReLU(0.01)
    # TODO(synk): nn.Dropout is identity in eval mode; train-mode masking omitted.

    y = jnp.dot(h.astype(jnp.bfloat16), w2_ref[...],
                preferred_element_type=jnp.float32) + b2
    o_ref[...] = y.astype(o_ref.dtype)               # bf16 lane-dense store


# --------------------------- parameter preparation ----------------------------
def _fold_bn(params):
    inv_std = 1.0 / jnp.sqrt(params["bn_var"] + BN_EPS)
    eff_scale = params["bn_gamma"] * inv_std
    eff_bias = params["bn_beta"] + (params["b1"] - params["bn_mean"]) * eff_scale
    return eff_scale, eff_bias


def _pack_params(params):
    """Fold BN scale into w1, pad weights lane-dense bf16, pack biases into one buffer."""
    eff_scale, eff_bias = _fold_bn(params)

    w1 = params["w1"].reshape(K_REAL, CHANNELS) * eff_scale[None, :]    # scale folded
    w1_pad = jnp.zeros((K_REAL, H_PAD), jnp.bfloat16)
    w1_pad = w1_pad.at[:, :CHANNELS].set(w1.astype(jnp.bfloat16))

    w2_pad = jnp.zeros((H_PAD, N_PAD), jnp.bfloat16)
    w2_pad = w2_pad.at[:CHANNELS, :C_OUT].set(params["w2"].astype(jnp.bfloat16))

    p = jnp.zeros((8, LANE), jnp.float32)
    p = p.at[0, :CHANNELS].set(eff_bias)
    p = p.at[1, :C_OUT].set(params["b2"].reshape(-1))
    return w1_pad, w2_pad, p


def _im2col(x_flat):
    """(B, T, C_IN) -> (B*T_out, KW*C_IN) rows for the fused valid-conv GEMM."""
    # TODO(synk): could be moved inside the kernel (overlapping pl.ds loads) to
    # drop the 3x row replication; kept here for simplicity since the output
    # stream now dominates HBM traffic.
    B, T, _ = x_flat.shape
    t_out = T - KW + 1
    cols = jnp.stack([x_flat[:, k:k + t_out, :] for k in range(KW)], axis=2)
    return cols.reshape(B * t_out, K_REAL), t_out


# --------------------------- forward() semantics ------------------------------
def temporal_model_forward(x, params):
    """x: (B, T, num_joints_in, in_features) -> (B, T_out, num_joints_out, 3)."""
    assert x.ndim == 4
    assert x.shape[-2] == NUM_JOINTS_IN
    assert x.shape[-1] == IN_FEATURES
    B, T = x.shape[0], x.shape[1]

    # x.view(B, T, -1); the permute(0,2,1) of forward() is absorbed by the
    # channels-last / im2col layout used by the kernel.
    x_flat = x.reshape(B, T, C_IN).astype(jnp.float32)
    x_cols, t_out = _im2col(x_flat)                      # (M, KW*C_IN)
    M = B * t_out

    # Tile sizing: keep >= num_tc grid steps (v7x has 2 TCs sharing the
    # "parallel" grid); shrink the tile rather than the step count at small M.
    min_steps = _tensorcores_per_chip()
    m_tile = min(M_TILE_MAX, max(LANE, _round_up(pl.cdiv(M, min_steps), LANE)))
    num_steps = max(min_steps, pl.cdiv(M, m_tile))
    M_pad = num_steps * m_tile

    x_pad = jnp.zeros((M_pad, K_REAL), jnp.bfloat16)
    x_pad = x_pad.at[:M, :].set(x_cols.astype(jnp.bfloat16))

    w1_pad, w2_pad, p_packed = _pack_params(params)

    bytes_accessed = (M_pad * K_REAL * 2          # im2col rows (bf16)
                      + K_REAL * H_PAD * 2        # expand weight
                      + H_PAD * N_PAD * 2         # shrink weight
                      + 8 * LANE * 4              # packed biases
                      + M_pad * N_PAD * 2)        # bf16 output
    flops = 2 * M_pad * LANE * LANE * 2           # two (padded) GEMMs, advisory

    y_pad = pl.pallas_call(
        _fused_block_kernel,
        out_shape=jax.ShapeDtypeStruct((M_pad, N_PAD), jnp.bfloat16),
        grid=(num_steps,),
        in_specs=[
            # im2col rows: last dim = full array dim (24) -> no HBM lane padding.
            pl.BlockSpec((m_tile, K_REAL), lambda i: (i, 0)),
            # Grid-invariant operands (index_map -> (0,0)); small enough that
            # double-buffering them is negligible.
            pl.BlockSpec((K_REAL, H_PAD), lambda i: (0, 0)),   # expand conv weight
            pl.BlockSpec((8, LANE), lambda i: (0, 0)),         # packed biases
            pl.BlockSpec((H_PAD, N_PAD), lambda i: (0, 0)),    # shrink conv weight
        ],
        out_specs=pl.BlockSpec((m_tile, N_PAD), lambda i: (i, 0)),
        compiler_params=pltpu.CompilerParams(
            dimension_semantics=("parallel",)),
        cost_estimate=pl.CostEstimate(flops=flops, transcendentals=0,
                                      bytes_accessed=bytes_accessed),
    )(x_pad, w1_pad, p_packed, w2_pad)

    # Un-pad (lane-dense bf16 output was 128 wide; real channels = C_OUT).
    y = y_pad[:M, :C_OUT].astype(jnp.float32).reshape(B, t_out, NUM_JOINTS_OUT, 3)
    # shrink_output: modeled as identity (see TODO at top).
    # TODO(synk): args.norm == 'lcn' residual branch omitted (external `args`).
    return y


# ------------------------------ pure-JAX reference ----------------------------
def _reference_forward(x, params):
    """Reference with the same bf16 rounding points as the kernel (f32 math)."""
    B, T = x.shape[0], x.shape[1]
    xf = x.reshape(B, T, C_IN).astype(jnp.float32)
    t_out = T - KW + 1
    xb = xf.astype(jnp.bfloat16).astype(jnp.float32)

    eff_scale, eff_bias = _fold_bn(params)
    w1 = params["w1"].reshape(K_REAL, CHANNELS) * eff_scale[None, :]
    w1b = w1.astype(jnp.bfloat16).astype(jnp.float32).reshape(KW, C_IN, CHANNELS)
    w2b = params["w2"].astype(jnp.bfloat16).astype(jnp.float32)

    acc = jnp.zeros((B, t_out, CHANNELS), jnp.float32)
    for k in range(KW):
        acc = acc + jnp.einsum("btc,cd->btd", xb[:, k:k + t_out, :], w1b[k])
    h = acc + eff_bias
    h = jnp.where(h >= 0, h, NEG_SLOPE * h)
    hb = h.astype(jnp.bfloat16).astype(jnp.float32)
    y = jnp.einsum("btc,cd->btd", hb, w2b) + params["b2"][0]
    y = y.astype(jnp.bfloat16).astype(jnp.float32)       # kernel stores bf16
    return y.reshape(B, -1, NUM_JOINTS_OUT, 3)


# ---------------------------------- main --------------------------------------
def _init_params(key):
    ks = jax.random.split(key, 6)
    return {
        "w1": 0.1 * jax.random.normal(ks[0], (KW, C_IN, CHANNELS), jnp.float32),
        "b1": 0.1 * jax.random.normal(ks[1], (CHANNELS,), jnp.float32),
        "bn_gamma": 1.0 + 0.05 * jax.random.normal(ks[2], (CHANNELS,), jnp.float32),
        "bn_beta": 0.05 * jax.random.normal(ks[3], (CHANNELS,), jnp.float32),
        "bn_mean": 0.02 * jnp.arange(CHANNELS, dtype=jnp.float32),
        "bn_var": 1.0 + 0.01 * jnp.arange(CHANNELS, dtype=jnp.float32),
        "w2": 0.1 * jax.random.normal(ks[4], (CHANNELS, C_OUT), jnp.float32),
        "b2": 0.1 * jax.random.normal(ks[5], (1, C_OUT), jnp.float32),
    }


if __name__ == "__main__":
    key = jax.random.PRNGKey(0)
    k_x, k_p = jax.random.split(key)
    B, T = 2, 8
    x = jax.random.normal(k_x, (B, T, NUM_JOINTS_IN, IN_FEATURES), jnp.float32)
    params = _init_params(k_p)

    fwd = jax.jit(temporal_model_forward)
    y = jax.block_until_ready(fwd(x, params))
    y_ref = jax.block_until_ready(_reference_forward(x, params))

    assert y.shape == (B, T - KW + 1, NUM_JOINTS_OUT, 3), y.shape
    assert jnp.allclose(y, y_ref, atol=1e-2, rtol=1e-2), "mismatch vs reference"

    print("KERNEL_OK")
</pallas_src>

<mosaic_0001>
module attributes {stable_mosaic.version = 11 : i64} {
  func.func @_fused_block_kernel(%arg0: i32, %arg1: memref<128x24xbf16, #tpu.memory_space<vmem>>, %arg2: memref<24x128xbf16, #tpu.memory_space<vmem>>, %arg3: memref<8x128xf32, #tpu.memory_space<vmem>>, %arg4: memref<128x128xbf16, #tpu.memory_space<vmem>>, %arg5: memref<128x128xbf16, #tpu.memory_space<vmem>>) attributes {dimension_semantics = [#tpu.dimension_semantics<parallel>], iteration_bounds = array<i64: 2>, scalar_prefetch = 0 : i64, scratch_operands = 0 : i64, tpu.core_type = #tpu.core_type<tc>, window_params = [{transform_indices = @transform_0, window_bounds = array<i64: 128, 24>}, {pipeline_mode = #tpu.pipeline_mode<synchronous>, transform_indices = @transform_1, window_bounds = array<i64: 24, 128>}, {pipeline_mode = #tpu.pipeline_mode<synchronous>, transform_indices = @transform_2, window_bounds = array<i64: 8, 128>}, {pipeline_mode = #tpu.pipeline_mode<synchronous>, transform_indices = @transform_3, window_bounds = array<i64: 128, 128>}, {transform_indices = @transform_4, window_bounds = array<i64: 128, 128>}]} {
    %c0 = arith.constant 0 : index
    %c0_0 = arith.constant 0 : index
    %0 = vector.load %arg1[%c0, %c0_0] : memref<128x24xbf16, #tpu.memory_space<vmem>>, vector<128x24xbf16>
    %c0_1 = arith.constant 0 : index
    %c0_2 = arith.constant 0 : index
    %1 = vector.load %arg2[%c0_1, %c0_2] : memref<24x128xbf16, #tpu.memory_space<vmem>>, vector<24x128xbf16>
    %cst = arith.constant dense<0.000000e+00> : vector<128x128xf32>
    %2 = tpu.matmul %0, %1, %cst {dimension_numbers = #tpu.dot_dimension_numbers<[1], [0], [0], [1], [0, 0, 1, 1], [], []>} : vector<128x24xbf16>, vector<24x128xbf16>, vector<128x128xf32> -> vector<128x128xf32>
    %c0_3 = arith.constant 0 : index
    %c0_4 = arith.constant 0 : index
    %3 = vector.load %arg3[%c0_3, %c0_4] : memref<8x128xf32, #tpu.memory_space<vmem>>, vector<1x128xf32>
    %c1 = arith.constant 1 : index
    %c0_5 = arith.constant 0 : index
    %4 = vector.load %arg3[%c1, %c0_5] : memref<8x128xf32, #tpu.memory_space<vmem>>, vector<1x128xf32>
    %5 = vector.broadcast %3 : vector<1x128xf32> to vector<128x128xf32>
    %6 = arith.addf %2, %5 : vector<128x128xf32>
    %cst_6 = arith.constant 0.000000e+00 : f32
    %7 = vector.broadcast %cst_6 : f32 to vector<128x128xf32>
    %8 = arith.cmpf oge, %6, %7 : vector<128x128xf32>
    %cst_7 = arith.constant 0.00999999977 : f32
    %9 = vector.broadcast %cst_7 : f32 to vector<128x128xf32>
    %10 = arith.mulf %9, %6 : vector<128x128xf32>
    %11 = arith.select %8, %6, %10 : vector<128x128xi1>, vector<128x128xf32>
    %12 = arith.truncf %11 : vector<128x128xf32> to vector<128x128xbf16>
    %c0_8 = arith.constant 0 : index
    %c0_9 = arith.constant 0 : index
    %13 = vector.load %arg4[%c0_8, %c0_9] : memref<128x128xbf16, #tpu.memory_space<vmem>>, vector<128x128xbf16>
    %cst_10 = arith.constant dense<0.000000e+00> : vector<128x128xf32>
    %14 = tpu.matmul %12, %13, %cst_10 {dimension_numbers = #tpu.dot_dimension_numbers<[1], [0], [0], [1], [0, 0, 1, 1], [], []>} : vector<128x128xbf16>, vector<128x128xbf16>, vector<128x128xf32> -> vector<128x128xf32>
    %15 = vector.broadcast %4 : vector<1x128xf32> to vector<128x128xf32>
    %16 = arith.addf %14, %15 : vector<128x128xf32>
    %17 = arith.truncf %16 : vector<128x128xf32> to vector<128x128xbf16>
    %c0_11 = arith.constant 0 : index
    %c0_12 = arith.constant 0 : index
    %18 = vector.load %arg5[%c0_11, %c0_12] : memref<128x128xbf16, #tpu.memory_space<vmem>>, vector<128x128xbf16>
    tpu.vector_store %arg5[%c0_11, %c0_12], %17 {strides = array<i32>} : memref<128x128xbf16, #tpu.memory_space<vmem>>, vector<128x128xbf16>,
    return
  }
  func.func @transform_0(%arg0: i32) -> (i32, i32) {
    %c0_i32 = arith.constant 0 : i32
    %c0_i32_0 = arith.constant 0 : i32
    return %arg0, %c0_i32 : i32, i32
  }
  func.func @transform_1(%arg0: i32) -> (i32, i32) {
    %c0_i32 = arith.constant 0 : i32
    %c0_i32_0 = arith.constant 0 : i32
    %c0_i32_1 = arith.constant 0 : i32
    return %c0_i32, %c0_i32_0 : i32, i32
  }
  func.func @transform_2(%arg0: i32) -> (i32, i32) {
    %c0_i32 = arith.constant 0 : i32
    %c0_i32_0 = arith.constant 0 : i32
    %c0_i32_1 = arith.constant 0 : i32
    return %c0_i32, %c0_i32_0 : i32, i32
  }
  func.func @transform_3(%arg0: i32) -> (i32, i32) {
    %c0_i32 = arith.constant 0 : i32
    %c0_i32_0 = arith.constant 0 : i32
    %c0_i32_1 = arith.constant 0 : i32
    return %c0_i32, %c0_i32_0 : i32, i32
  }
  func.func @transform_4(%arg0: i32) -> (i32, i32) {
    %c0_i32 = arith.constant 0 : i32
    %c0_i32_0 = arith.constant 0 : i32
    return %arg0, %c0_i32 : i32, i32
  }
}

</mosaic_0001>

<bundles_post_ra>
// kernel: temporal_model_forward.1
= control target key start
LH: loop header
LB: loop body
LE: loop exit
PB: predicated region body
PF: predicated region fallthrough
CT: control target
= control target key end

     0   :  { %s1031_s15 = smov 0   ;;  %s1137_s0 = inlined_call_operand.vmem [shape: bf16[256,24], index: 0, kind: input, shape index: {}]   ;;  %s1138_s1 = inlined_call_operand.vmem [shape: bf16[24,128], index: 1, kind: input, shape index: {}]   ;;  %s1139_s2 = inlined_call_operand.vmem [shape: f32[8,128], index: 2, kind: input, shape index: {}]   ;;  %s1140_s3 = inlined_call_operand.vmem [shape: bf16[128,128], index: 3, kind: input, shape index: {}]   ;;  %s1141_s4 = inlined_call_operand.vmem [shape: bf16[256,128], index: 4, kind: output, shape index: {}]  }
   0x1 LB: > { %s759_s16 = sadd.s32 4294967295, %s1004_s15   ;;  %p763_p0 = scmp.ge.s32.totalorder %s1004_s15, 1  ;;  %s1004_s15 = sphi %s1031_s15, %s14_s15  }
   0x2   : > { %p163_p1 = scmp.lt.s32.totalorder %s1004_s15, 3 }
   0x4   : > { %p164_p2 = pnand %p763_p0, %p163_p1 }
   0x5   : > { %v980_v0 = vld [vmem:[%s1138_s1] sm:$0xff] (!%p164_p2)   ;;  %vm301_vm0 = vcmask (!%p164_p2), 1043456   ;;  %v981_v1 = vld [vmem:[%s1138_s1 + $0x8] ss:$0 sps:$4 sm:$0xff] (!%p164_p2)   ;;  %s764_s21 = sshll.u32 (!%p164_p2), %s759_s16, 4  ;;  %vm276_vm1 = vcmask (!%p164_p2), 195584  }
   0x6   : > { %167 = sbr.rel (%p164_p2) target bundleno = 485 (0x1e5), region = 36  ;;  %903 = vmatprep.subr.bf16.mxu0 (!%p164_p2), %v980_v0  ;;  %p190_p3 = scmp.lt.s32.totalorder (!%p164_p2), %s764_s21, 31  ;;  %v990_v2 = vld [vmem:[%s1140_s3] sm:$0xff] (!%p164_p2)   ;;  %v303_v3 = vsel (!%p164_p2), %vm301_vm0, %v981_v1, 0  ;;  %v991_v4 = vld [vmem:[%s1140_s3 + $0x8] sm:$0xff] (!%p164_p2)   ;;  %v992_v5 = vld [vmem:[%s1140_s3 + $0x10] sm:$0xff] (!%p164_p2)  }
   0x7   : > { %904 = vmatpush3.bf16.msra.mxu0 (!%p164_p2), %v980_v0  ;;  %955 = vmatprep.subr.bf16.mxu1 (!%p164_p2), %v990_v2  ;;  %v993_v9 = vld [vmem:[%s1140_s3 + $0x18] sm:$0xff] (!%p164_p2)   ;;  %v994_v11 = vld [vmem:[%s1140_s3 + $0x20] sm:$0xff] (!%p164_p2)   ;;  %v995_v16 = vld [vmem:[%s1140_s3 + $0x28] sm:$0xff] (!%p164_p2)  }
   0x8   : > { %971 = vmatprep.subr.msk.bf16.mxu0 (!%p164_p2), %vm301_vm0, %v981_v1  ;;  %963 = vmatpush3.bf16.msra.mxu1 (!%p164_p2), %v990_v2  ;;  %v996_v17 = vld [vmem:[%s1140_s3 + $0x30] sm:$0xff] (!%p164_p2)   ;;  %v997_v18 = vld [vmem:[%s1140_s3 + $0x38] sm:$0xff] (!%p164_p2)   ;;  %v1098_v19 = vld [vmem:[%s1139_s2] ss:$0 sm:$0xff] (!%p164_p2) }
   0x9   : > { %956 = vmatprep.subr.bf16.mxu1 (!%p164_p2), %v991_v4 }
   0xb   : > { %906 = vmatpush3.bf16.msra.mxu0 (!%p164_p2), %v303_v3 }
   0xc   : > { %923 = vmatprep.subr.bf16.mxu0 (!%p164_p2), %v990_v2  ;;  %964 = vmatpush3.bf16.msra.mxu1 (!%p164_p2), %v991_v4 }
   0xd   : > { %s1143_s21 = smov (!%p190_p3, %s764_s21), 31  ;;  %957 = vmatprep.subr.bf16.mxu1 %v992_v5 }
   0xe   : > { %s765_s26 = sshll.u32 %s1143_s21, 2 }
   0xf   : > { %s1062_s5 = scalar_lea.vmem %s1137_s0, %s765_s26  ;;  %s1124_s24 = scalar_lea.vmem %s1141_s4, %s765_s26 }
  0x10   : > { %v982_v6 = vld [vmem:[%s1062_s5] sm:$0xff]   ;;  %v983_v7 = vld [vmem:[%s1062_s5 + $0x8] sm:$0xff]   ;;  %v984_v8 = vld [vmem:[%s1062_s5 + $0x10] sm:$0xff]   ;;  %965 = vmatpush3.bf16.msra.mxu1 %v992_v5 }
  0x11   : > { %907 = vmatprep.mubr.msk.bf16.mxu0 %vm276_vm1, %v982_v6  ;;  %v985_v10 = vld [vmem:[%s1062_s5 + $0x18] sm:$0xff]   ;;  %958 = vmatprep.subr.bf16.mxu1 %v993_v9  ;;  %v986_v12 = vld [vmem:[%s1062_s5 + $0x20] sm:$0xff]   ;;  %v987_v13 = vld [vmem:[%s1062_s5 + $0x28] sm:$0xff]  }
  0x12   : > { %908 = vmatmul.mubr.msk.bf16.vlgmr.msra.gmra.mrb[0].mxu0 %vm276_vm1, %v983_v7  ;;  %v988_v14 = vld [vmem:[%s1062_s5 + $0x30] sm:$0xff]   ;;  %v989_v15 = vld [vmem:[%s1062_s5 + $0x38] sm:$0xff]  }
  0x13   : > { %911 = vmatprep.mubr.msk.bf16.mxu0 %vm276_vm1, %v984_v8  ;;  %924 = vmatpush3.bf16.msra.mxu0 %v990_v2 }
  0x14   : > { %925 = vmatprep.subr.bf16.mxu0 %v991_v4  ;;  %966 = vmatpush3.bf16.msra.mxu1 %v993_v9 }
  0x15   : > { %959 = vmatprep.subr.bf16.mxu1 %v994_v11 }
  0x17   : > { %926 = vmatpush3.bf16.msra.mxu0 %v991_v4 }
  0x18   : > { %927 = vmatprep.subr.bf16.mxu0 %v992_v5  ;;  %967 = vmatpush3.bf16.msra.mxu1 %v994_v11 }
  0x19   : > { %960 = vmatprep.subr.bf16.mxu1 %v995_v16 }
  0x1a   : > { %912 = vmatmul.mubr.msk.bf16.gmra.mrb[4].mxu0 %vm276_vm1, %v985_v10 }
  0x1b   : > { %915 = vmatprep.mubr.msk.bf16.mxu0 %vm276_vm1, %v986_v12  ;;  %928 = vmatpush3.bf16.msra.mxu0 %v992_v5 }
  0x1c   : > { %929 = vmatprep.subr.bf16.mxu0 %v993_v9  ;;  %968 = vmatpush3.bf16.msra.mxu1 %v995_v16 }
  0x1d   : > { %961 = vmatprep.subr.bf16.mxu1 %v996_v17 }
  0x1f   : > { %930 = vmatpush3.bf16.msra.mxu0 %v993_v9 }
  0x20   : > { %931 = vmatprep.subr.bf16.mxu0 %v994_v11  ;;  %969 = vmatpush3.bf16.msra.mxu1 %v996_v17 }
  0x21   : > { %962 = vmatprep.subr.bf16.mxu1 %v997_v18 }
  0x22   : > { %916 = vmatmul.mubr.msk.bf16.gmra.mrb[8].mxu0 %vm276_vm1, %v987_v13 }
  0x23   : > { %919 = vmatprep.mubr.msk.bf16.mxu0 %vm276_vm1, %v988_v14  ;;  %932 = vmatpush3.bf16.msra.mxu0 %v994_v11 }
  0x24   : > { %933 = vmatprep.subr.bf16.mxu0 %v995_v16  ;;  %970 = vmatpush3.bf16.msra.mxu1 %v997_v18 }
  0x27   : > { %934 = vmatpush3.bf16.msra.mxu0 %v995_v16 }
  0x28   : > { %935 = vmatprep.subr.bf16.mxu0 %v996_v17 }
  0x2a   : > { %920 = vmatmul.mubr.msk.bf16.gmra.mrb[12].mxu0 %vm276_vm1, %v989_v15 }
  0x2b   : > { %936 = vmatpush3.bf16.msra.mxu0 %v996_v17 }
  0x2c   : > { %937 = vmatprep.subr.bf16.mxu0 %v997_v18 }
  0x2f   : > { %938 = vmatpush3.bf16.msra.mxu0 %v997_v18 }
  0xe5   : > { %v909_v20 = vpop.f32.mrb[0].mxu0 }
  0xe6   : > { %v348_v21 = vadd.f32 %v909_v20, %v1098_v19  ;;  %v339_v22 = vpop.f32.mrb[1].mxu0 }
  0xe7   : > { %v340_v23 = vadd.f32 %v1098_v19, %v339_v22  ;;  %v910_v24 = vpop.f32.mrb[2].mxu0 }
  0xe8   : > { %v420_v25 = vmul.f32 0.01, %v348_v21  ;;  %v351_v26 = vadd.f32 %v910_v24, %v1098_v19  ;;  %v342_v27 = vpop.f32.mrb[3].mxu0  ;;  %vm404_vm2 = vcmp.ge.f32.partialorder %v348_v21, 0.0 }
  0xe9   : > { %v418_v28 = vmul.f32 0.01, %v340_v23  ;;  %v343_v29 = vadd.f32 %v1098_v19, %v342_v27  ;;  %vm402_vm3 = vcmp.ge.f32.partialorder %v340_v23, 0.0 }
  0xea   : > { %vm405_vm4 = vcmp.ge.f32.partialorder %v351_v26, 0.0  ;;  %v421_v30 = vmul.f32 0.01, %v351_v26  ;;  %v436_v32 = vsel %vm404_vm2, %v348_v21, %v420_v25 }
  0xeb   : > { %vm403_vm5 = vcmp.ge.f32.partialorder %v343_v29, 0.0  ;;  %v419_v31 = vmul.f32 0.01, %v343_v29  ;;  %v434_v36 = vsel %vm402_vm3, %v340_v23, %v418_v28 }
  0xec   : > { %v437_v33 = vsel %vm405_vm4, %v351_v26, %v421_v30 }
  0xed   : > { %v451_v34 = vpack.c.bf16 %v437_v33, %v436_v32  ;;  %v913_v35 = vpop.f32.mrb[4].mxu0  ;;  %v435_v37 = vsel %vm403_vm5, %v343_v29, %v419_v31 }
  0xee   : > { %v364_v38 = vadd.f32 %v913_v35, %v1098_v19  ;;  %v355_v39 = vpop.f32.mrb[5].mxu0  ;;  %v450_v40 = vpack.c.bf16 %v435_v37, %v434_v36 }
  0xef   : > { %v356_v41 = vadd.f32 %v1098_v19, %v355_v39  ;;  %v914_v42 = vpop.f32.mrb[6].mxu0 }
  0xf0   : > { %v424_v43 = vmul.f32 0.01, %v364_v38  ;;  %v367_v44 = vadd.f32 %v914_v42, %v1098_v19  ;;  %v358_v45 = vpop.f32.mrb[7].mxu0  ;;  %939 = vmatprep.mubr.bf16.mxu0 %v450_v40  ;;  %vm408_vm6 = vcmp.ge.f32.partialorder %v364_v38, 0.0 }
  0xf1   : > { %v422_v46 = vmul.f32 0.01, %v356_v41  ;;  %v359_v47 = vadd.f32 %v1098_v19, %v358_v45  ;;  %940 = vmatmul.mubr.bf16.vlgmr.msra.gmra.mrb[16].mxu0 %v451_v34  ;;  %vm406_vm8 = vcmp.ge.f32.partialorder %v356_v41, 0.0 }
  0xf2   : > { %vm409_vm7 = vcmp.ge.f32.partialorder %v367_v44, 0.0  ;;  %v425_v48 = vmul.f32 0.01, %v367_v44  ;;  %v440_v50 = vsel %vm408_vm6, %v364_v38, %v424_v43 }
  0xf3   : > { %v423_v49 = vmul.f32 0.01, %v359_v47  ;;  %vm407_vm9 = vcmp.ge.f32.partialorder %v359_v47, 0.0  ;;  %v438_v53 = vsel %vm406_vm8, %v356_v41, %v422_v46 }
  0xf4   : > { %v441_v51 = vsel %vm409_vm7, %v367_v44, %v425_v48 }
  0xf5   : > { %v917_v52 = vpop.f32.mrb[8].mxu0  ;;  %v439_v54 = vsel %vm407_vm9, %v359_v47, %v423_v49  ;;  %v453_v55 = vpack.c.bf16 %v441_v51, %v440_v50 }
  0xf6   : > { %v380_v56 = vadd.f32 %v917_v52, %v1098_v19  ;;  %v371_v57 = vpop.f32.mrb[9].mxu0  ;;  %v452_v58 = vpack.c.bf16 %v439_v54, %v438_v53 }
  0xf7   : > { %v372_v59 = vadd.f32 %v1098_v19, %v371_v57  ;;  %v918_v60 = vpop.f32.mrb[10].mxu0 }
  0xf8   : > { %v428_v61 = vmul.f32 0.01, %v380_v56  ;;  %v383_v62 = vadd.f32 %v918_v60, %v1098_v19  ;;  %v374_v63 = vpop.f32.mrb[11].mxu0  ;;  %943 = vmatprep.mubr.bf16.mxu1 %v452_v58  ;;  %vm412_vm10 = vcmp.ge.f32.partialorder %v380_v56, 0.0 }
  0xf9   : > { %v426_v0 = vmul.f32 0.01, %v372_v59  ;;  %v375_v1 = vadd.f32 %v1098_v19, %v374_v63  ;;  %944 = vmatmul.mubr.bf16.vlgmr.msra.gmra.mrb[0].mxu1 %v453_v55  ;;  %vm410_vm11 = vcmp.ge.f32.partialorder %v372_v59, 0.0 }
  0xfa   : > { %vm413_vm12 = vcmp.ge.f32.partialorder %v383_v62, 0.0  ;;  %v429_v2 = vmul.f32 0.01, %v383_v62  ;;  %v444_v4 = vsel %vm412_vm10, %v380_v56, %v428_v61 }
  0xfb   : > { %vm411_vm13 = vcmp.ge.f32.partialorder %v375_v1, 0.0  ;;  %v427_v3 = vmul.f32 0.01, %v375_v1  ;;  %v442_v7 = vsel %vm410_vm11, %v372_v59, %v426_v0 }
  0xfc   : > { %v445_v5 = vsel %vm413_vm12, %v383_v62, %v429_v2 }
  0xfd   : > { %v921_v6 = vpop.f32.mrb[12].mxu0  ;;  %v443_v8 = vsel %vm411_vm13, %v375_v1, %v427_v3  ;;  %v455_v9 = vpack.c.bf16 %v445_v5, %v444_v4 }
  0xfe   : > { %v396_v10 = vadd.f32 %v921_v6, %v1098_v19  ;;  %v387_v11 = vpop.f32.mrb[13].mxu0  ;;  %v454_v12 = vpack.c.bf16 %v443_v8, %v442_v7 }
  0xff   : > { %v388_v13 = vadd.f32 %v1098_v19, %v387_v11  ;;  %v922_v14 = vpop.f32.mrb[14].mxu0 }
 0x100   : > { %v432_v15 = vmul.f32 0.01, %v396_v10  ;;  %v399_v16 = vadd.f32 %v922_v14, %v1098_v19  ;;  %v390_v17 = vpop.f32.mrb[15].mxu0  ;;  %947 = vmatprep.mubr.bf16.mxu1 %v454_v12  ;;  %vm416_vm14 = vcmp.ge.f32.partialorder %v396_v10, 0.0 }
 0x101   : > { %v430_v18 = vmul.f32 0.01, %v388_v13  ;;  %v391_v20 = vadd.f32 %v1098_v19, %v390_v17  ;;  %948 = vmatmul.mubr.bf16.gmra.mrb[4].mxu1 %v455_v9  ;;  %vm414_vm15 = vcmp.ge.f32.partialorder %v388_v13, 0.0  ;;  %v787_v19 = vld [vmem:[%s1139_s2 + $0x1] ss:$0 sm:$0xff] }
 0x102   : > { %vm417_vm0 = vcmp.ge.f32.partialorder %v399_v16, 0.0  ;;  %v433_v21 = vmul.f32 0.01, %v399_v16  ;;  %v448_v23 = vsel %vm416_vm14, %v396_v10, %v432_v15 }
 0x103   : > { %vm415_vm1 = vcmp.ge.f32.partialorder %v391_v20, 0.0  ;;  %v431_v22 = vmul.f32 0.01, %v391_v20  ;;  %v446_v25 = vsel %vm414_vm15, %v388_v13, %v430_v18 }
 0x104   : > { %v449_v24 = vsel %vm417_vm0, %v399_v16, %v433_v21 }
 0x105   : > { %v447_v26 = vsel %vm415_vm1, %v391_v20, %v431_v22  ;;  %v457_v27 = vpack.c.bf16 %v449_v24, %v448_v23 }
 0x106   : > { %v456_v28 = vpack.c.bf16 %v447_v26, %v446_v25 }
 0x108   : > { %951 = vmatprep.mubr.bf16.mxu1 %v456_v28 }
 0x109   : > { %952 = vmatmul.mubr.bf16.gmra.mrb[8].mxu1 %v457_v27 }
 0x1c4   : > { %v941_v29 = vpop.f32.mrb[16].mxu0 }
 0x1c5   : > { %v560_v30 = vpop.f32.mrb[17].mxu0  ;;  %v569_v32 = vadd.f32 %v941_v29, %v787_v19 }
 0x1c6   : > { %v942_v31 = vpop.f32.mrb[18].mxu0  ;;  %v561_v35 = vadd.f32 %v787_v19, %v560_v30 }
 0x1c7   : > { %v572_v33 = vadd.f32 %v942_v31, %v787_v19  ;;  %v563_v34 = vpop.f32.mrb[19].mxu0 }
 0x1c8   : > { %v564_v36 = vadd.f32 %v787_v19, %v563_v34 }
 0x1c9   : > { %v838_v37 = vpack.c.bf16 %v572_v33, %v569_v32 }
 0x1ca   : > { %v833_v38 = vpack.c.bf16 %v564_v36, %v561_v35 }
 0x1cb   : > { %870 = vst [vmem:[%s1124_s24 + $0x8] sm:$0xff] %v838_v37  }
 0x1cc   : > { %834 = vst [vmem:[%s1124_s24] sm:$0xff] %v833_v38   ;;  %v945_v39 = vpop.f32.mrb[0].mxu1 }
 0x1cd   : > { %v576_v40 = vpop.f32.mrb[1].mxu1  ;;  %v585_v42 = vadd.f32 %v945_v39, %v787_v19 }
 0x1ce   : > { %v946_v41 = vpop.f32.mrb[2].mxu1  ;;  %v577_v45 = vadd.f32 %v787_v19, %v576_v40 }
 0x1cf   : > { %v588_v43 = vadd.f32 %v946_v41, %v787_v19  ;;  %v579_v44 = vpop.f32.mrb[3].mxu1 }
 0x1d0   : > { %v580_v46 = vadd.f32 %v787_v19, %v579_v44 }
 0x1d1   : > { %v848_v47 = vpack.c.bf16 %v588_v43, %v585_v42 }
 0x1d2   : > { %v843_v48 = vpack.c.bf16 %v580_v46, %v577_v45 }
 0x1d3   : > { %872 = vst [vmem:[%s1124_s24 + $0x18] sm:$0xff] %v848_v47  }
 0x1d4   : > { %871 = vst [vmem:[%s1124_s24 + $0x10] sm:$0xff] %v843_v48   ;;  %v949_v49 = vpop.f32.mrb[4].mxu1 }
 0x1d5   : > { %v592_v50 = vpop.f32.mrb[5].mxu1  ;;  %v601_v52 = vadd.f32 %v949_v49, %v787_v19 }
 0x1d6   : > { %v950_v51 = vpop.f32.mrb[6].mxu1  ;;  %v593_v55 = vadd.f32 %v787_v19, %v592_v50 }
 0x1d7   : > { %v604_v53 = vadd.f32 %v950_v51, %v787_v19  ;;  %v595_v54 = vpop.f32.mrb[7].mxu1 }
 0x1d8   : > { %v596_v56 = vadd.f32 %v787_v19, %v595_v54 }
 0x1d9   : > { %v858_v57 = vpack.c.bf16 %v604_v53, %v601_v52 }
 0x1da   : > { %v853_v58 = vpack.c.bf16 %v596_v56, %v593_v55 }
 0x1db   : > { %874 = vst [vmem:[%s1124_s24 + $0x28] sm:$0xff] %v858_v57  }
 0x1dc   : > { %873 = vst [vmem:[%s1124_s24 + $0x20] sm:$0xff] %v853_v58   ;;  %v953_v59 = vpop.f32.mrb[8].mxu1 }
 0x1dd   : > { %v608_v60 = vpop.f32.mrb[9].mxu1  ;;  %v617_v62 = vadd.f32 %v953_v59, %v787_v19 }
 0x1de   : > { %v954_v61 = vpop.f32.mrb[10].mxu1  ;;  %v609_v1 = vadd.f32 %v787_v19, %v608_v60 }
 0x1df   : > { %v620_v63 = vadd.f32 %v954_v61, %v787_v19  ;;  %v611_v0 = vpop.f32.mrb[11].mxu1 }
 0x1e0   : > { %v612_v2 = vadd.f32 %v787_v19, %v611_v0 }
 0x1e1   : > { %v868_v3 = vpack.c.bf16 %v620_v63, %v617_v62 }
 0x1e2   : > { %v863_v4 = vpack.c.bf16 %v612_v2, %v609_v1 }
 0x1e3   : > { %876 = vst [vmem:[%s1124_s24 + $0x38] sm:$0xff] %v868_v3  }
 0x1e4   : > { %875 = vst [vmem:[%s1124_s24 + $0x30] sm:$0xff] %v863_v4  }
 0x1e5 PF: > { %s14_s15 = sadd.s32 1, %s1004_s15  }
 0x1e6   : > { %p11_p4 = scmp.ge.s32.totalorder %s14_s15, 4  }
 0x1e8   :  { %13 = sbr.rel (!%p11_p4) target bundleno = 1 (0x1), region = 66 }

</bundles_post_ra>
